<compile_context>
chip_gen: v7x
topology: tpu7x:2x2x1
jax: 0.10.0
libtpu: 0.0.40
codegen_flags: <defaults>
</compile_context>

<pallas_src>
import functools

import jax
import jax.numpy as jnp
from jax.experimental import pallas as pl
from jax.experimental.pallas import tpu as pltpu

C_IN, C_OUT, KSIZE = 3, 64, 7
_K = C_IN * KSIZE * KSIZE          # 147 (kept unpadded: less HBM traffic than padding to 256)
_K2 = 2 * _K                       # 294: two conv-output rows folded per matmul row
_EPS = 1e-5
_NEG = -1e30                       # pool "pad" value; never survives the max
_TM2 = 8192                        # folded-row tile (double-buffered blocks ~14 MiB)
_VMEM_LIMIT = 40 * 1024 * 1024     # fits v5e/v6e (128 MiB) and v7x (64 MiB/TC) with headroom


def _round_up(x, m):
    return (x + m - 1) // m * m


# -----------------------------------------------------------------------------
# Stage 1: im2col matmul (conv) + per-tile BN partial statistics.
#   x_ref    : [tm2, 2K]  bf16  (two conv-output rows folded per matmul row)
#   w_ref    : [2K, 128]  bf16  block-diagonal [[W, 0], [0, W]], W = [K, 64]
#   y_ref    : [tm2, 128] bf16  lane-dense conv output (row 2i | row 2i+1 on lanes)
#   psum/psq : [1, 128]   f32   per-tile partial sums (from the f32 accumulator)
# -----------------------------------------------------------------------------
def _conv_kernel(x_ref, w_ref, y_ref, psum_ref, psq_ref):
    y = jnp.dot(x_ref[...], w_ref[...], preferred_element_type=jnp.float32)
    y_ref[...] = y.astype(y_ref.dtype)
    psum_ref[...] = jnp.sum(y, axis=0, keepdims=True)
    psq_ref[...] = jnp.sum(y * y, axis=0, keepdims=True)


def _conv_matmul(xcol2, w2, tm2):
    m2p, k2 = xcol2.shape
    ntiles = m2p // tm2
    flops = 2 * m2p * k2 * 128
    bytes_accessed = (xcol2.size * 2 + w2.size * 2 + m2p * 128 * 2
                      + 2 * ntiles * 128 * 4)
    return pl.pallas_call(
        _conv_kernel,
        out_shape=(
            jax.ShapeDtypeStruct((m2p, 128), jnp.bfloat16),
            jax.ShapeDtypeStruct((ntiles, 1, 128), jnp.float32),
            jax.ShapeDtypeStruct((ntiles, 1, 128), jnp.float32),
        ),
        grid=(ntiles,),
        in_specs=[
            pl.BlockSpec((tm2, k2), lambda i: (i, 0)),
            pl.BlockSpec((k2, 128), lambda i: (0, 0)),     # weights stay resident
        ],
        out_specs=(
            pl.BlockSpec((tm2, 128), lambda i: (i, 0)),
            pl.BlockSpec((None, 1, 128), lambda i: (i, 0, 0)),
            pl.BlockSpec((None, 1, 128), lambda i: (i, 0, 0)),
        ),
        compiler_params=pltpu.CompilerParams(
            dimension_semantics=("parallel",),
            vmem_limit_bytes=_VMEM_LIMIT,
        ),
        cost_estimate=pl.CostEstimate(
            flops=flops, transcendentals=0, bytes_accessed=bytes_accessed),
    )(xcol2, w2)


# -----------------------------------------------------------------------------
# Stage 2: fused 3x3 / stride-2 max-pool + BN affine + ReLU on the pair-folded
# conv output, grid = (image, Hp-tile).
#   q_ref     : [Ho*Wp, 128] bf16  whole image, folded: lanes 0:64 = conv col 2j,
#                                  lanes 64:128 = conv col 2j+1, rows = (h, j)
#   scale/shift: [1, 128]    f32   folded BN affine, channel vector tiled twice
#   out_ref   : [THP, Wp/2, 128]   packed pooled output: lanes 0:64 = pool col u,
#                                  lanes 64:128 = pool col u + Wp/2
# Max is taken on raw conv values, BN + ReLU applied afterwards (valid: scale > 0).
# Only the stride-2 output columns are computed; borders handled in-VMEM with _NEG.
# -----------------------------------------------------------------------------
def _pool_kernel(q_ref, scale_ref, shift_ref, out_ref, *, thp, wp):
    t = pl.program_id(1)
    wph = wp // 2
    nrows = 2 * thp * wp                                  # folded rows per Hp-tile
    r0 = t * nrows
    if nrows % 8 == 0:
        r0 = pl.multiple_of(r0, 8)
    blk = q_ref[pl.ds(r0, nrows), :].astype(jnp.float32)  # conv rows [2*t*thp, +2*thp)
    blk = blk.reshape(thp, 2 * wp, 128)
    even = blk[:, :wp, :]                                 # conv rows 2*ph
    odd = blk[:, wp:, :]                                  # conv rows 2*ph + 1
    # halo row (conv row 2*t*thp - 1): static slice valid for t == 1 (n_t <= 2),
    # replaced by the -inf pool border for t == 0.
    halo = q_ref[pl.ds((2 * thp - 1) * wp, wp), :].astype(jnp.float32)
    halo = jnp.where(t == 0, _NEG, halo).reshape(1, wp, 128)
    oddprev = jnp.concatenate([halo, odd[:-1]], axis=0)   # conv rows 2*ph - 1
    hm = jnp.maximum(jnp.maximum(even, odd), oddprev)     # H-direction 3-tap, [thp, wp, 128]

    # W-direction 3-tap at stride 2, packed half-split: a -> pool cols [0, Wp/2),
    # b -> pool cols [Wp/2, Wp). Lane swizzles via roll(64); everything stays 128-wide.
    a = hm[:, :wph, :]
    b = hm[:, wph:, :]
    ra = pltpu.roll(a, 64, 2)                             # lane halves swapped
    rb = pltpu.roll(b, 64, 2)
    neg = jnp.full((thp, 1, 128), _NEG, jnp.float32)
    ra_s = jnp.concatenate([neg, ra[:, :-1, :]], axis=1)            # left tap, lo group
    b_s = jnp.concatenate([a[:, wph - 1:wph, :], b[:, :-1, :]], axis=1)  # left tap, hi group
    lo = jax.lax.broadcasted_iota(jnp.int32, (thp, wph, 128), 2) < 64
    x1 = jnp.where(lo, a, rb)      # center taps
    x2 = jnp.where(lo, ra, b)      # right taps
    x3 = jnp.where(lo, ra_s, b_s)  # left taps
    o = jnp.maximum(jnp.maximum(x1, x2), x3)
    out_ref[...] = jnp.maximum(o * scale_ref[...] + shift_ref[...], 0.0)


def _fused_pool(yf, scale128, shift128, *, n, ho, wp, thp, n_t):
    hp = ho // 2
    wph = wp // 2
    img_rows = ho * wp
    bytes_accessed = n * img_rows * 128 * 2 + n * hp * wph * 128 * 4 + 2 * 128 * 4
    flops = 10 * n * hp * wp * C_OUT
    kern = functools.partial(_pool_kernel, thp=thp, wp=wp)
    return pl.pallas_call(
        kern,
        out_shape=jax.ShapeDtypeStruct((n, hp, wph, 128), jnp.float32),
        grid=(n, n_t),
        in_specs=[
            pl.BlockSpec((img_rows, 128), lambda b, t: (b, 0)),   # reused across t
            pl.BlockSpec((1, 128), lambda b, t: (0, 0)),
            pl.BlockSpec((1, 128), lambda b, t: (0, 0)),
        ],
        out_specs=pl.BlockSpec((None, thp, wph, 128), lambda b, t: (b, t, 0, 0)),
        compiler_params=pltpu.CompilerParams(
            dimension_semantics=("parallel", "parallel"),
            vmem_limit_bytes=_VMEM_LIMIT,
        ),
        cost_estimate=pl.CostEstimate(
            flops=flops, transcendentals=0, bytes_accessed=bytes_accessed),
    )(yf, scale128, shift128)


# -----------------------------------------------------------------------------
# Parameter init (mirrors init_weights)
# -----------------------------------------------------------------------------
def init_params(key):
    fan_in = C_IN * KSIZE * KSIZE
    conv_w = jax.random.normal(key, (C_OUT, C_IN, KSIZE, KSIZE), jnp.float32) * jnp.sqrt(
        2.0 / fan_in)                                  # kaiming_normal_, relu
    return {
        "conv_w": conv_w,
        "bn_gamma": jnp.ones((C_OUT,), jnp.float32),   # constant_(1)
        "bn_beta": jnp.zeros((C_OUT,), jnp.float32),   # constant_(0)
    }


# -----------------------------------------------------------------------------
# Forward wrapper (layout plumbing / im2col glue in JAX, hot paths in Pallas)
# -----------------------------------------------------------------------------
@jax.jit
def sk_clf_stem(x_nchw, params):
    n, c, h, w = x_nchw.shape
    assert c == C_IN
    stride, pad = 2, 3
    ho = (h + 2 * pad - KSIZE) // stride + 1
    wo = (w + 2 * pad - KSIZE) // stride + 1
    # explicit layout assumptions of the folded-lane kernels
    assert ho % 2 == 0 and wo % 4 == 0, (ho, wo)
    assert (ho * wo // 2) % 8 == 0, (ho, wo)
    m = n * ho * wo

    # ---- im2col (glue) in bf16; columns ordered (c_in, kh, kw) to match OIHW weights ----
    # TODO(synk): fold im2col into stage 1 (per-tap strided DMA) to remove this HBM pass.
    x_nhwc = jnp.transpose(x_nchw, (0, 2, 3, 1)).astype(jnp.bfloat16)
    xp = jnp.pad(x_nhwc, ((0, 0), (pad, pad), (pad, pad), (0, 0)))
    taps = []
    for kh in range(KSIZE):
        for kw in range(KSIZE):
            taps.append(xp[:, kh:kh + stride * ho:stride, kw:kw + stride * wo:stride, :])
    patches = jnp.stack(taps, axis=-2)                          # [N,Ho,Wo,49,C_in]
    patches = jnp.transpose(patches, (0, 1, 2, 4, 3))           # [N,Ho,Wo,C_in,49]
    xcol = patches.reshape(m, _K)                               # [M, 147] bf16

    # ---- fold row pairs onto lanes: [M/2, 2K] @ [[W,0],[0,W]] -> [M/2, 128] ----
    m2 = m // 2
    ntiles = -(-m2 // _TM2)
    tm2 = _round_up(-(-m2 // ntiles), 8)
    m2p = ntiles * tm2
    xcol2 = jnp.pad(xcol, ((0, 2 * m2p - m), (0, 0))).reshape(m2p, _K2)  # zero rows inert

    w_mat = params["conv_w"].reshape(C_OUT, _K).T               # [K, 64]
    zeros = jnp.zeros_like(w_mat)
    w2 = jnp.concatenate(
        [jnp.concatenate([w_mat, zeros], axis=1),
         jnp.concatenate([zeros, w_mat], axis=1)], axis=0).astype(jnp.bfloat16)  # [2K, 128]

    # ---- Pallas stage 1: conv matmul + partial BN statistics ----
    yf, psum, psq = _conv_matmul(xcol2, w2, tm2)                # yf: [m2p, 128] bf16

    # ---- tiny reduce of partials -> folded BN scale/shift (batch stats, biased var) ----
    s128 = jnp.sum(psum[:, 0, :], axis=0)
    q128 = jnp.sum(psq[:, 0, :], axis=0)
    ch_sum = s128[:C_OUT] + s128[C_OUT:]
    ch_sq = q128[:C_OUT] + q128[C_OUT:]
    mean = ch_sum / m
    var = jnp.maximum(ch_sq / m - mean * mean, 0.0)
    scale = params["bn_gamma"] * jax.lax.rsqrt(var + _EPS)
    shift = params["bn_beta"] - mean * scale
    scale128 = jnp.concatenate([scale, scale]).reshape(1, 128)  # duplicate onto both halves
    shift128 = jnp.concatenate([shift, shift]).reshape(1, 128)

    # ---- Pallas stage 2: fused max-pool + BN + ReLU, straight off the folded yf ----
    hp, wpf = ho // 2, wo // 2
    n_t = 2 if (hp % 2 == 0 and ((hp // 2) * wo) % 8 == 0) else 1   # >=2 steps for v7x
    thp = hp // n_t
    out_packed = _fused_pool(yf, scale128, shift128,
                             n=n, ho=ho, wp=wpf, thp=thp, n_t=n_t)  # [N,Hp,Wp/2,128]

    # unfold packed pooled columns (pw = g*(Wp/2) + u) and return NCHW
    out5 = out_packed.reshape(n, hp, wpf // 2, 2, C_OUT)
    return jnp.transpose(out5, (0, 4, 1, 3, 2)).reshape(n, C_OUT, hp, wpf)


# -----------------------------------------------------------------------------
# Pure-JAX reference (loose numerical sanity check; bf16 matmul tolerance)
# -----------------------------------------------------------------------------
def _reference(x_nchw, params):
    y = jax.lax.conv_general_dilated(
        x_nchw, params["conv_w"], window_strides=(2, 2), padding=((3, 3), (3, 3)),
        dimension_numbers=("NCHW", "OIHW", "NCHW"))
    mean = jnp.mean(y, axis=(0, 2, 3), keepdims=True)
    var = jnp.mean((y - mean) ** 2, axis=(0, 2, 3), keepdims=True)
    g = params["bn_gamma"].reshape(1, -1, 1, 1)
    b = params["bn_beta"].reshape(1, -1, 1, 1)
    z = jnp.maximum((y - mean) * jax.lax.rsqrt(var + _EPS) * g + b, 0.0)
    return jax.lax.reduce_window(z, -jnp.inf, jax.lax.max,
                                 window_dimensions=(1, 1, 3, 3),
                                 window_strides=(1, 1, 2, 2),
                                 padding=((0, 0), (0, 0), (1, 1), (1, 1)))


if __name__ == "__main__":
    key = jax.random.PRNGKey(0)
    kx, kw = jax.random.split(key)
    x = jax.random.normal(kx, (2, 3, 16, 16), dtype=jnp.float32)   # NCHW input
    params = init_params(kw)

    out = sk_clf_stem(x, params)
    jax.block_until_ready(out)
    assert out.shape == (2, 64, 4, 4), out.shape
    assert out.dtype == jnp.float32

    ref = _reference(x, params)
    err = float(jnp.max(jnp.abs(out - ref)))
    assert err < 1e-1, f"max abs err {err}"
    print("KERNEL_OK")
</pallas_src>

<mosaic_0001>
module attributes {stable_mosaic.version = 11 : i64} {
  func.func @_conv_kernel(%arg0: i32, %arg1: memref<64x294xbf16, #tpu.memory_space<vmem>>, %arg2: memref<294x128xbf16, #tpu.memory_space<vmem>>, %arg3: memref<64x128xbf16, #tpu.memory_space<vmem>>, %arg4: memref<1x1x128xf32, #tpu.memory_space<vmem>>, %arg5: memref<1x1x128xf32, #tpu.memory_space<vmem>>) attributes {dimension_semantics = [#tpu.dimension_semantics<parallel>], iteration_bounds = array<i64: 1>, scalar_prefetch = 0 : i64, scratch_operands = 0 : i64, tpu.core_type = #tpu.core_type<tc>, window_params = [{transform_indices = @transform_0, window_bounds = array<i64: 64, 294>}, {pipeline_mode = #tpu.pipeline_mode<synchronous>, transform_indices = @transform_1, window_bounds = array<i64: 294, 128>}, {transform_indices = @transform_2, window_bounds = array<i64: 64, 128>}, {transform_indices = @transform_3, window_bounds = array<i64: 1, 1, 128>}, {transform_indices = @transform_4, window_bounds = array<i64: 1, 1, 128>}]} {
    %c0 = arith.constant 0 : index
    %c0_0 = arith.constant 0 : index
    %0 = vector.load %arg1[%c0, %c0_0] : memref<64x294xbf16, #tpu.memory_space<vmem>>, vector<64x294xbf16>
    %c0_1 = arith.constant 0 : index
    %c0_2 = arith.constant 0 : index
    %1 = vector.load %arg2[%c0_1, %c0_2] : memref<294x128xbf16, #tpu.memory_space<vmem>>, vector<294x128xbf16>
    %cst = arith.constant dense<0.000000e+00> : vector<64x128xf32>
    %2 = tpu.matmul %0, %1, %cst {dimension_numbers = #tpu.dot_dimension_numbers<[1], [0], [0], [1], [0, 0, 1, 1], [], []>} : vector<64x294xbf16>, vector<294x128xbf16>, vector<64x128xf32> -> vector<64x128xf32>
    %3 = arith.truncf %2 : vector<64x128xf32> to vector<64x128xbf16>
    %c0_3 = arith.constant 0 : index
    %c0_4 = arith.constant 0 : index
    %4 = vector.load %arg3[%c0_3, %c0_4] : memref<64x128xbf16, #tpu.memory_space<vmem>>, vector<64x128xbf16>
    tpu.vector_store %arg3[%c0_3, %c0_4], %3 {strides = array<i32>} : memref<64x128xbf16, #tpu.memory_space<vmem>>, vector<64x128xbf16>,
    %cst_5 = arith.constant dense<0.000000e+00> : vector<128xf32>
    %5 = vector.multi_reduction <add>, %2, %cst_5 [0] : vector<64x128xf32> to vector<128xf32>
    %6 = vector.shape_cast %5 : vector<128xf32> to vector<1x128xf32>
    %c0_6 = arith.constant 0 : index
    %c0_7 = arith.constant 0 : index
    %c0_8 = arith.constant 0 : index
    %7 = vector.load %arg4[%c0_6, %c0_7, %c0_8] : memref<1x1x128xf32, #tpu.memory_space<vmem>>, vector<1x1x128xf32>
    %8 = vector.shape_cast %7 : vector<1x1x128xf32> to vector<1x128xf32>
    %9 = vector.shape_cast %6 : vector<1x128xf32> to vector<1x1x128xf32>
    tpu.vector_store %arg4[%c0_6, %c0_7, %c0_8], %9 {strides = array<i32>} : memref<1x1x128xf32, #tpu.memory_space<vmem>>, vector<1x1x128xf32>,
    %10 = arith.mulf %2, %2 : vector<64x128xf32>
    %cst_9 = arith.constant dense<0.000000e+00> : vector<128xf32>
    %11 = vector.multi_reduction <add>, %10, %cst_9 [0] : vector<64x128xf32> to vector<128xf32>
    %12 = vector.shape_cast %11 : vector<128xf32> to vector<1x128xf32>
    %c0_10 = arith.constant 0 : index
    %c0_11 = arith.constant 0 : index
    %c0_12 = arith.constant 0 : index
    %13 = vector.load %arg5[%c0_10, %c0_11, %c0_12] : memref<1x1x128xf32, #tpu.memory_space<vmem>>, vector<1x1x128xf32>
    %14 = vector.shape_cast %13 : vector<1x1x128xf32> to vector<1x128xf32>
    %15 = vector.shape_cast %12 : vector<1x128xf32> to vector<1x1x128xf32>
    tpu.vector_store %arg5[%c0_10, %c0_11, %c0_12], %15 {strides = array<i32>} : memref<1x1x128xf32, #tpu.memory_space<vmem>>, vector<1x1x128xf32>,
    return
  }
  func.func @transform_0(%arg0: i32) -> (i32, i32) {
    %c0_i32 = arith.constant 0 : i32
    %c0_i32_0 = arith.constant 0 : i32
    return %arg0, %c0_i32 : i32, i32
  }
  func.func @transform_1(%arg0: i32) -> (i32, i32) {
    %c0_i32 = arith.constant 0 : i32
    %c0_i32_0 = arith.constant 0 : i32
    %c0_i32_1 = arith.constant 0 : i32
    return %c0_i32, %c0_i32_0 : i32, i32
  }
  func.func @transform_2(%arg0: i32) -> (i32, i32) {
    %c0_i32 = arith.constant 0 : i32
    %c0_i32_0 = arith.constant 0 : i32
    return %arg0, %c0_i32 : i32, i32
  }
  func.func @transform_3(%arg0: i32) -> (i32, i32, i32) {
    %c0_i32 = arith.constant 0 : i32
    %c0_i32_0 = arith.constant 0 : i32
    %c0_i32_1 = arith.constant 0 : i32
    return %arg0, %c0_i32, %c0_i32_0 : i32, i32, i32
  }
  func.func @transform_4(%arg0: i32) -> (i32, i32, i32) {
    %c0_i32 = arith.constant 0 : i32
    %c0_i32_0 = arith.constant 0 : i32
    %c0_i32_1 = arith.constant 0 : i32
    return %arg0, %c0_i32, %c0_i32_0 : i32, i32, i32
  }
}

module attributes {stable_mosaic.version = 11 : i64} {
  func.func @_pool_kernel(%arg0: i32, %arg1: i32, %arg2: memref<32x128xbf16, #tpu.memory_space<vmem>>, %arg3: memref<1x128xf32, #tpu.memory_space<vmem>>, %arg4: memref<1x128xf32, #tpu.memory_space<vmem>>, %arg5: memref<1x2x2x128xf32, #tpu.memory_space<vmem>>) attributes {dimension_semantics = [#tpu.dimension_semantics<parallel>, #tpu.dimension_semantics<parallel>], iteration_bounds = array<i64: 2, 2>, scalar_prefetch = 0 : i64, scratch_operands = 0 : i64, tpu.core_type = #tpu.core_type<tc>, window_params = [{transform_indices = @transform_0, window_bounds = array<i64: 32, 128>}, {pipeline_mode = #tpu.pipeline_mode<synchronous>, transform_indices = @transform_1, window_bounds = array<i64: 1, 128>}, {pipeline_mode = #tpu.pipeline_mode<synchronous>, transform_indices = @transform_2, window_bounds = array<i64: 1, 128>}, {transform_indices = @transform_3, window_bounds = array<i64: 1, 2, 2, 128>}]} {
    %c16_i32 = arith.constant 16 : i32
    %0 = arith.muli %arg1, %c16_i32 : i32
    %1 = tpu.assume_multiple %0, 8 : i32
    %2 = arith.index_cast %1 : i32 to index
    %c0 = arith.constant 0 : index
    %3 = vector.load %arg2[%2, %c0] : memref<32x128xbf16, #tpu.memory_space<vmem>>, vector<16x128xbf16>
    %4 = arith.extf %3 : vector<16x128xbf16> to vector<16x128xf32>
    %5 = vector.shape_cast %4 : vector<16x128xf32> to vector<2x8x128xf32>
    %6 = vector.extract_strided_slice %5 {offsets = [0, 0, 0], sizes = [2, 4, 128], strides = [1, 1, 1]} : vector<2x8x128xf32> to vector<2x4x128xf32>
    %7 = vector.extract_strided_slice %5 {offsets = [0, 4, 0], sizes = [2, 4, 128], strides = [1, 1, 1]} : vector<2x8x128xf32> to vector<2x4x128xf32>
    %c12 = arith.constant 12 : index
    %c0_0 = arith.constant 0 : index
    %8 = vector.load %arg2[%c12, %c0_0] : memref<32x128xbf16, #tpu.memory_space<vmem>>, vector<4x128xbf16>
    %9 = arith.extf %8 : vector<4x128xbf16> to vector<4x128xf32>
    %c0_i32 = arith.constant 0 : i32
    %10 = arith.cmpi eq, %arg1, %c0_i32 : i32
    %cst = arith.constant -1.000000e+30 : f32
    %11 = vector.broadcast %cst : f32 to vector<4x128xf32>
    %12 = arith.select %10, %11, %9 : vector<4x128xf32>
    %13 = vector.shape_cast %12 : vector<4x128xf32> to vector<1x4x128xf32>
    %14 = vector.extract_strided_slice %7 {offsets = [0, 0, 0], sizes = [1, 4, 128], strides = [1, 1, 1]} : vector<2x4x128xf32> to vector<1x4x128xf32>
    %15 = tpu.concatenate %13, %14 in 0 : vector<1x4x128xf32>, vector<1x4x128xf32> -> vector<2x4x128xf32>
    %16 = arith.maximumf %6, %7 : vector<2x4x128xf32>
    %17 = arith.maximumf %16, %15 : vector<2x4x128xf32>
    %18 = vector.extract_strided_slice %17 {offsets = [0, 0, 0], sizes = [2, 2, 128], strides = [1, 1, 1]} : vector<2x4x128xf32> to vector<2x2x128xf32>
    %19 = vector.extract_strided_slice %17 {offsets = [0, 2, 0], sizes = [2, 2, 128], strides = [1, 1, 1]} : vector<2x4x128xf32> to vector<2x2x128xf32>
    %c64_i32 = arith.constant 64 : i32
    %20 = tpu.dynamic_rotate %18 by %c64_i32 dim 2 : vector<2x2x128xf32>, i32 -> vector<2x2x128xf32>
    %c64_i32_1 = arith.constant 64 : i32
    %21 = tpu.dynamic_rotate %19 by %c64_i32_1 dim 2 : vector<2x2x128xf32>, i32 -> vector<2x2x128xf32>
    %cst_2 = arith.constant -1.000000e+30 : f32
    %22 = vector.broadcast %cst_2 : f32 to vector<2x1x128xf32>
    %23 = vector.extract_strided_slice %20 {offsets = [0, 0, 0], sizes = [2, 1, 128], strides = [1, 1, 1]} : vector<2x2x128xf32> to vector<2x1x128xf32>
    %24 = tpu.concatenate %22, %23 in 1 : vector<2x1x128xf32>, vector<2x1x128xf32> -> vector<2x2x128xf32>
    %25 = vector.extract_strided_slice %18 {offsets = [0, 1, 0], sizes = [2, 1, 128], strides = [1, 1, 1]} : vector<2x2x128xf32> to vector<2x1x128xf32>
    %26 = vector.extract_strided_slice %19 {offsets = [0, 0, 0], sizes = [2, 1, 128], strides = [1, 1, 1]} : vector<2x2x128xf32> to vector<2x1x128xf32>
    %27 = tpu.concatenate %25, %26 in 1 : vector<2x1x128xf32>, vector<2x1x128xf32> -> vector<2x2x128xf32>
    %28 = tpu.iota {dimensions = array<i32: 2>} : vector<2x2x128xi32>
    %c64_i32_3 = arith.constant 64 : i32
    %29 = vector.broadcast %c64_i32_3 : i32 to vector<2x2x128xi32>
    %30 = arith.cmpi slt, %28, %29 : vector<2x2x128xi32>
    %31 = arith.select %30, %18, %21 : vector<2x2x128xi1>, vector<2x2x128xf32>
    %32 = arith.select %30, %20, %19 : vector<2x2x128xi1>, vector<2x2x128xf32>
    %33 = arith.select %30, %24, %27 : vector<2x2x128xi1>, vector<2x2x128xf32>
    %34 = arith.maximumf %31, %32 : vector<2x2x128xf32>
    %35 = arith.maximumf %34, %33 : vector<2x2x128xf32>
    %c0_4 = arith.constant 0 : index
    %c0_5 = arith.constant 0 : index
    %36 = vector.load %arg3[%c0_4, %c0_5] : memref<1x128xf32, #tpu.memory_space<vmem>>, vector<1x128xf32>
    %37 = vector.shape_cast %36 : vector<1x128xf32> to vector<1x1x128xf32>
    %38 = vector.broadcast %37 : vector<1x1x128xf32> to vector<2x2x128xf32>
    %39 = arith.mulf %35, %38 : vector<2x2x128xf32>
    %c0_6 = arith.constant 0 : index
    %c0_7 = arith.constant 0 : index
    %40 = vector.load %arg4[%c0_6, %c0_7] : memref<1x128xf32, #tpu.memory_space<vmem>>, vector<1x128xf32>
    %41 = vector.shape_cast %40 : vector<1x128xf32> to vector<1x1x128xf32>
    %42 = vector.broadcast %41 : vector<1x1x128xf32> to vector<2x2x128xf32>
    %43 = arith.addf %39, %42 : vector<2x2x128xf32>
    %cst_8 = arith.constant 0.000000e+00 : f32
    %44 = vector.broadcast %cst_8 : f32 to vector<2x2x128xf32>
    %45 = arith.maximumf %43, %44 : vector<2x2x128xf32>
    %c0_9 = arith.constant 0 : index
    %c0_10 = arith.constant 0 : index
    %c0_11 = arith.constant 0 : index
    %c0_12 = arith.constant 0 : index
    %46 = vector.load %arg5[%c0_9, %c0_10, %c0_11, %c0_12] : memref<1x2x2x128xf32, #tpu.memory_space<vmem>>, vector<1x2x2x128xf32>
    %47 = vector.shape_cast %46 : vector<1x2x2x128xf32> to vector<2x2x128xf32>
    %48 = vector.shape_cast %45 : vector<2x2x128xf32> to vector<1x2x2x128xf32>
    tpu.vector_store %arg5[%c0_9, %c0_10, %c0_11, %c0_12], %48 {strides = array<i32>} : memref<1x2x2x128xf32, #tpu.memory_space<vmem>>, vector<1x2x2x128xf32>,
    return
  }
  func.func @transform_0(%arg0: i32, %arg1: i32) -> (i32, i32) {
    %c0_i32 = arith.constant 0 : i32
    %c0_i32_0 = arith.constant 0 : i32
    return %arg0, %c0_i32 : i32, i32
  }
  func.func @transform_1(%arg0: i32, %arg1: i32) -> (i32, i32) {
    %c0_i32 = arith.constant 0 : i32
    %c0_i32_0 = arith.constant 0 : i32
    %c0_i32_1 = arith.constant 0 : i32
    return %c0_i32, %c0_i32_0 : i32, i32
  }
  func.func @transform_2(%arg0: i32, %arg1: i32) -> (i32, i32) {
    %c0_i32 = arith.constant 0 : i32
    %c0_i32_0 = arith.constant 0 : i32
    %c0_i32_1 = arith.constant 0 : i32
    return %c0_i32, %c0_i32_0 : i32, i32
  }
  func.func @transform_3(%arg0: i32, %arg1: i32) -> (i32, i32, i32, i32) {
    %c0_i32 = arith.constant 0 : i32
    %c0_i32_0 = arith.constant 0 : i32
    %c0_i32_1 = arith.constant 0 : i32
    return %arg0, %arg1, %c0_i32, %c0_i32_0 : i32, i32, i32, i32
  }
}

</mosaic_0001>

<bundles_post_ra>
// kernel: sk_clf_stem.3
= control target key start
LH: loop header
LB: loop body
LE: loop exit
PB: predicated region body
PF: predicated region fallthrough
CT: control target
= control target key end

     0   :  { %s500_s12 = smov 0   ;;  %s502_s13 = smov 0   ;;  %s575_s0 = inlined_call_operand.vmem [shape: bf16[64,128], index: 0, kind: input, shape index: {}]   ;;  %s576_s1 = inlined_call_operand.vmem [shape: f32[1,128], index: 1, kind: input, shape index: {}]   ;;  %s577_s2 = inlined_call_operand.vmem [shape: f32[1,128], index: 2, kind: input, shape index: {}]   ;;  %s578_s3 = inlined_call_operand.vmem [shape: f32[2,4,2,128], index: 3, kind: output, shape index: {}]  }
   0x1   :  { %s504_s14 = smov 0   ;;  %s506_s15 = smov 0  }
   0x2   :  { %s508_s16 = smov 0  }
   0x3 LB: > { %s22_s17 = sadd.s32 1, %s469_s14  ;;  %s25_s18 = sadd.s32 1, %s473_s15  ;;  %s477_s16 = sphi %s508_s16, %s13_s16   ;;  %s473_s15 = sphi %s506_s15, %s582_s15   ;;  %s469_s14 = sphi %s504_s14, %s581_s14   ;;  %s465_s13 = sphi %s502_s13, %s580_s13   ;;  %s461_s12 = sphi %s500_s12, %s579_s12  }
   0x4   : > { %p23_p0 = scmp.ge.s32.totalorder %s22_s17, 2  ;;  %p377_p1 = scmp.ge.s32.totalorder %s477_s16, 1 }
   0x5   : > { %p152_p2 = scmp.lt.s32.totalorder %s477_s16, 5 }
   0x6   : > { %s584_s17 = smov (%p23_p0, %s22_s17), 0  ;;  %s586_s18 = smov (!%p23_p0, %s25_s18), %s473_s15 }
   0x7   : > { %p153_p3 = pnand %p377_p1, %p152_p2  ;;  %p27_p4 = scmp.ge.s32.totalorder %s586_s18, 2 }
   0x8   : > { %s378_s19 = sshll.u32 (!%p153_p3), %s465_s13, 2  ;;  %s383_s20 = sshll.u32 (!%p153_p3), %s461_s12, 4  ;;  %v252_v17 = vlaneseq (!%p153_p3)  ;;  %vm245_vm1 = vcmask (!%p153_p3), 1040384   ;;  %v385_v29 = vld [vmem:[%s576_s1] ss:$0 sm:$0xff] (!%p153_p3) }
   0x9   : > { %s588_s18 = smov (%p27_p4, %s586_s18), 0  ;;  %156 = sbr.rel (%p153_p3) target bundleno = 164 (0xa4), region = 32 }
   0xa   : > { %p181_p5 = scmp.lt.s32.totalorder (!%p153_p3), %s378_s19, 7  ;;  %s197_s21 = sshra.s32 (!%p153_p3), %s383_s20, 3  ;;  %v253_v18 = vand.u32 (!%p153_p3), 127, %v252_v17  ;;  %v386_v34 = vld [vmem:[%s577_s2] ss:$0 sm:$0xff] (!%p153_p3) }
   0xb   : > { %s384_s22 = sshll.u32 (!%p153_p3), %s197_s21, 2  ;;  %p207_p6 = scmp.eq.s32.totalorder (!%p153_p3), %s461_s12, 0 }
   0xc   : > { %s479_s29 = smov (!%p153_p3), 64   ;;  %s380_s30 = sshll.u32 (!%p153_p3), %s461_s12, 1  ;;  %vm254_vm2 = vcmp.lt.s32.totalorder (!%p153_p3), %v253_v18, 64 }
   0xd   : > { %p187_p7 = scmp.lt.s32.totalorder (!%p153_p3), %s465_s13, 1  ;;  %p189_p8 = scmp.lt.s32.totalorder (!%p153_p3), %s380_s30, 3 }
  0x10   : > { %s590_s19 = smov (!%p181_p5, %s378_s19), 7  ;;  %s592_s13 = smov (!%p187_p7, %s465_s13), 1 }
  0x11   : > { %s208_s23 = scalar_select %p207_p6, 1, 0 }
  0x12   : > { %s379_s24 = sshll.u32 %s590_s19, 2  ;;  %s594_s30 = smov (!%p189_p8, %s380_s30), 3 }
  0x13   : > { %s184_s27 = scalar_lea.vmem %s575_s0, %s379_s24  ;;  %v209_v0 = vstv %s208_s23  ;;  %s381_s4 = sshll.u32 %s592_s13, 2 }
  0x14   : > { %s200_s28 = scalar_lea.vmem %s184_s27, %s384_s22  ;;  %v205_v1 = vld [vmem:[%s184_s27 + $0x4] sm:$0xc]  ;;  %vm210_vm0 = vcmp.eq.s32.totalorder %v209_v0, 1  ;;  %s192_s5 = sadd.s32 %s381_s4, %s594_s30 }
  0x15   : > { %v390_v2 = vld [vmem:[%s200_s28] sm:$0xff]   ;;  %v206_v3 = vunpack.c.l.bf16 %v205_v1  ;;  %s382_s10 = sshll.u32 %s192_s5, 1 }
  0x16   : > { %v391_v4 = vunpack.c.l.bf16 %v390_v2  ;;  %v392_v5 = vunpack.c.h.bf16 %v390_v2  ;;  %s194_s13 = scalar_lea.vmem %s578_s3, %s382_s10 }
  0x17   : > { %v211_v6 = vsel %vm210_vm0, -1e+30, %v206_v3 }
  0x18   : > { %v214_v7 = vrot.slane %v391_v4, 4  ;;  %v215_v8 = vrot.slane %v392_v5, 4  ;;  %v221_v9 = vrot.slane %v211_v6, 4 }
  0x1a   : > { %v218_v10 = vmax.f32 %v391_v4, %v214_v7  ;;  %v219_v11 = vmax.f32 %v392_v5, %v215_v8 }
  0x1c   : > { %v223_v12 = vmax.f32 %v218_v10, %v221_v9  ;;  %v224_v13 = vmax.f32 %v219_v11, %v214_v7 }
  0x1e   : > { %225 = vrot.lane.b32.xlu0 %v223_v12, %s479_s29  ;;  %v231_v14 = vrot.slane %v223_v12, 2  ;;  %v232_v15 = vrot.slane %v224_v13, 2  ;;  %v248_v20 = vrot.slane %v223_v12, 1  ;;  %v249_v33 = vrot.slane %v224_v13, 1 }
  0x20   : > { %235 = vrot.lane.b32.xlu1 %v231_v14, %s479_s29  ;;  %v434_v16 = vpack.i.bf16 %v232_v15, %v224_v13 }
  0x22   : > { %435 = vrot.lane.b32.xlu0 %v434_v16, %s479_s29 }
  0x90   : > { %v226_v19 = vpop.permute.xlu0 %225 }
  0x91   : > { %v241_v21 = vrot.slane %v226_v19, 7  ;;  %v257_v24 = vsel %vm254_vm2, %v226_v19, %v231_v14 }
  0x92   : > { %v236_v22 = vpop.permute.xlu1 %235 }
  0x93   : > { %v246_v23 = vsel %vm245_vm1, -1e+30, %v241_v21  ;;  %v255_v25 = vsel %vm254_vm2, %v223_v12, %v236_v22 }
  0x94   : > { %v259_v26 = vsel %vm254_vm2, %v246_v23, %v248_v20  ;;  %v261_v27 = vmax.f32 %v255_v25, %v257_v24  ;;  %v436_v28 = vpop.permute.xlu0 %435 }
  0x95   : > { %v438_v30 = vunpack.i.h.bf16 %v436_v28  ;;  %v437_v31 = vunpack.i.l.bf16 %v436_v28 }
  0x96   : > { %v263_v32 = vmax.f32 %v261_v27, %v259_v26 }
  0x97   : > { %v256_v35 = vsel %vm254_vm2, %v224_v13, %v438_v30  ;;  %v242_v36 = vrot.slane %v437_v31, 7  ;;  %v258_v37 = vsel %vm254_vm2, %v437_v31, %v232_v15 }
  0x98   : > { %v272_v38 = vmul.f32 %v385_v29, %v263_v32  ;;  %v262_v39 = vmax.f32 %v256_v35, %v258_v37 }
  0x99   : > { %v247_v40 = vsel %vm245_vm1, -1e+30, %v242_v36 }
  0x9a   : > { %v281_v41 = vadd.f32 %v386_v34, %v272_v38  ;;  %v260_v42 = vsel %vm254_vm2, %v247_v40, %v249_v33 }
  0x9b   : > { %v264_v43 = vmax.f32 %v262_v39, %v260_v42 }
  0x9c   : > { %v283_v44 = vmax.f32 %v281_v41, 0.0 }
  0x9d   : > { %v273_v45 = vmul.f32 %v385_v29, %v264_v43 }
  0x9e   : > { %285 = vst [vmem:[%s194_s13] sm:$0x3] %v283_v44 }
  0x9f   : > { %v282_v46 = vadd.f32 %v386_v34, %v273_v45 }
  0xa1   : > { %v284_v47 = vmax.f32 %v282_v46, 0.0 }
  0xa3   : > { %286 = vst [vmem:[%s194_s13 + $0x2] sm:$0x3] %v284_v47 }
  0xa4 PF: > { %s13_s16 = sadd.s32 1, %s477_s16   ;;  %s579_s12 = smov %s469_s14 }
  0xa5   : > { %p10_p9 = scmp.ge.s32.totalorder %s13_s16, 6   ;;  %s580_s13 = smov %s473_s15 }
  0xa6   : > { %s581_s14 = smov %s584_s17  ;;  %s582_s15 = smov %s588_s18 }
  0xa7   :  { %12 = sbr.rel (!%p10_p9) target bundleno = 3 (0x3), region = 63 }

// kernel: sk_clf_stem.2
= control target key start
LH: loop header
LB: loop body
LE: loop exit
PB: predicated region body
PF: predicated region fallthrough
CT: control target
= control target key end

     0   :  { %vm252_vm0 = vcmask 1042432   ;;  %vm239_vm1 = vcmask 310272   ;;  %s785_s1 = inlined_call_operand.vmem [shape: bf16[294,128], index: 1, kind: input, shape index: {}]   ;;  %s786_s0 = inlined_call_operand.vmem [shape: bf16[64,294], index: 0, kind: input, shape index: {}]   ;;  %s787_s2 = inlined_call_operand.vmem [shape: bf16[64,128], index: 2, kind: output, shape index: {0}]   ;;  %s788_s3 = inlined_call_operand.vmem [shape: f32[1,1,128], index: 3, kind: output, shape index: {1}]   ;;  %s789_s4 = inlined_call_operand.vmem [shape: f32[1,1,128], index: 4, kind: output, shape index: {2}]  }
   0x1   :  { %v610_v0 = vld [vmem:[%s785_s1 + $0x40] sm:$0xff]   ;;  %v612_v2 = vld [vmem:[%s785_s1 + $0x48] sm:$0xff]   ;;  %v614_v4 = vld [vmem:[%s785_s1 + $0x50] sm:$0xff]  }
   0x2   :  { %v611_v1 = vld [vmem:[%s785_s1] sm:$0xff]   ;;  %548 = vmatprep.subr.bf16.mxu0 %v610_v0  ;;  %v613_v3 = vld [vmem:[%s785_s1 + $0x8] sm:$0xff]   ;;  %v615_v5 = vld [vmem:[%s785_s1 + $0x10] sm:$0xff]  }
   0x3   :  { %549 = vmatpush3.bf16.msra.mxu0 %v611_v1  ;;  %v616_v6 = vld [vmem:[%s785_s1 + $0x58] sm:$0xff]   ;;  %v618_v8 = vld [vmem:[%s785_s1 + $0x60] sm:$0xff]   ;;  %v625_v11 = vld [vmem:[%s785_s1 + $0x88] sm:$0xff]  }
   0x4   :  { %550 = vmatprep.subr.bf16.mxu0 %v612_v2  ;;  %v617_v7 = vld [vmem:[%s785_s1 + $0x18] sm:$0xff]   ;;  %v622_v9 = vld [vmem:[%s785_s1 + $0x80] sm:$0xff]   ;;  %v620_v12 = vld [vmem:[%s785_s1 + $0x68] sm:$0xff]  }
   0x5   :  { %v619_v10 = vld [vmem:[%s785_s1 + $0x20] sm:$0xff]   ;;  %595 = vmatprep.subr.bf16.mxu1 %v622_v9  ;;  %v621_v13 = vld [vmem:[%s785_s1 + $0x28] sm:$0xff]   ;;  %v628_v14 = vld [vmem:[%s785_s1 + $0x90] ss:$0 sps:$4 sm:$0x77]  }
   0x6   :  { %596 = vmatpush3.bf16.msra.mxu1 %v622_v9  ;;  %v623_v15 = vld [vmem:[%s785_s1 + $0x70] sm:$0xff]   ;;  %v254_v17 = vsel %vm252_vm0, %v628_v14, 0  ;;  %v633_v19 = vld [vmem:[%s786_s0 + $0x20] ss:$12 sps:$4 sm:$0xff]   ;;  %v626_v21 = vld [vmem:[%s785_s1 + $0x78] sm:$0xff]  }
   0x7   :  { %551 = vmatpush3.bf16.msra.mxu0 %v613_v3  ;;  %597 = vmatprep.subr.bf16.mxu1 %v625_v11  ;;  %v631_v16 = vld [vmem:[%s786_s0 + $0x4] ss:$12 sps:$4 sm:$0xff]   ;;  %v632_v18 = vld [vmem:[%s786_s0 + $0x8] ss:$12 sps:$4 sm:$0xff]   ;;  %v627_v23 = vld [vmem:[%s785_s1 + $0x38] sm:$0xff]  }
   0x8   :  { %552 = vmatprep.subr.bf16.mxu0 %v614_v4  ;;  %288 = vmatprep.mubr.bf16.mxu0 %v631_v16  ;;  %v624_v20 = vld [vmem:[%s785_s1 + $0x30] sm:$0xff]   ;;  %v640_v22 = vld [vmem:[%s786_s0 + $0x38] ss:$12 sps:$4 sm:$0xff]   ;;  %v629_v24 = vld [vmem:[%s786_s0] ss:$12 sps:$4 sm:$0xff]  }
   0x9   :  { %601 = vmatprep.mubr.msk.bf16.mxu1 %vm239_vm1, %v632_v18  ;;  %v641_v25 = vld [vmem:[%s786_s0 + $0x50] ss:$12 sps:$4 sm:$0xff]   ;;  %v636_v27 = vld [vmem:[%s786_s0 + $0x18] ss:$12 sps:$4 sm:$0xff]   ;;  %v637_v28 = vld [vmem:[%s786_s0 + $0x34] ss:$12 sps:$4 sm:$0xff]  }
   0xa   :  { %598 = vmatpush3.bf16.msra.mxu1 %v625_v11  ;;  %v634_v26 = vld [vmem:[%s786_s0 + $0x1c] ss:$12 sps:$4 sm:$0xff]   ;;  %v642_v30 = vld [vmem:[%s786_s0 + $0x4c] ss:$12 sps:$4 sm:$0xff]  }
   0xb   :  { %553 = vmatpush3.bf16.msra.mxu0 %v615_v5  ;;  %609 = vmatprep.subr.msk.bf16.mxu1 %vm252_vm0, %v628_v14  ;;  %v639_v29 = vld [vmem:[%s786_s0 + $0x30] ss:$12 sps:$4 sm:$0xff]   ;;  %v644_v31 = vld [vmem:[%s786_s0 + $0x48] ss:$12 sps:$4 sm:$0xff]  }
   0xc   :  { %554 = vmatprep.subr.bf16.mxu0 %v616_v6 }
   0xe   :  { %600 = vmatpush3.bf16.msra.mxu1 %v254_v17 }
   0xf   :  { %555 = vmatpush3.bf16.msra.mxu0 %v617_v7 }
  0x10   :  { %556 = vmatprep.subr.bf16.mxu0 %v618_v8 }
  0x11   :  { %602 = vmatmul.mubr.msk.bf16.vlgmr.msra.gmra.mrb[0].mxu1 %vm239_vm1, %v633_v19 }
  0x12   :  { %605 = vmatprep.mubr.msk.bf16.mxu1 %vm239_vm1, %v640_v22 }
  0x13   :  { %557 = vmatpush3.bf16.msra.mxu0 %v619_v10 }
  0x14   :  { %558 = vmatprep.subr.bf16.mxu0 %v620_v12 }
  0x17   :  { %559 = vmatpush3.bf16.msra.mxu0 %v621_v13 }
  0x18   :  { %560 = vmatprep.subr.bf16.mxu0 %v623_v15 }
  0x19   :  { %606 = vmatmul.mubr.msk.bf16.gmra.mrb[4].mxu1 %vm239_vm1, %v641_v25 }
  0x1b   :  { %561 = vmatpush3.bf16.msra.mxu0 %v624_v20 }
  0x1c   :  { %562 = vmatprep.subr.bf16.mxu0 %v626_v21 }
  0x1f   :  { %563 = vmatpush3.bf16.msra.mxu0 %v627_v23 }
  0x22   :  { %289 = vmatmul.mubr.bf16.vlgmr.msra.gmra.mrb[0].mxu0 %v629_v24 }
  0x23   :  { %296 = vmatprep.mubr.bf16.mxu0 %v634_v26 }
  0x2a   :  { %297 = vmatmul.mubr.bf16.gmra.mrb[4].mxu0 %v636_v27 }
  0x2b   :  { %304 = vmatprep.mubr.bf16.mxu0 %v637_v28 }
  0x32   :  { %305 = vmatmul.mubr.bf16.gmra.mrb[8].mxu0 %v639_v29 }
  0x33   :  { %312 = vmatprep.mubr.bf16.mxu0 %v642_v30 }
  0x3a   :  { %313 = vmatmul.mubr.bf16.gmra.mrb[12].mxu0 %v644_v31 }
  0xe4   :  { %v603_v32 = vpop.f32.mrb[0].mxu1 }
  0xe5   :  { %v355_v33 = vpop.f32.mrb[1].mxu1 }
  0xe6   :  { %v604_v34 = vpop.f32.mrb[2].mxu1 }
  0xe7   :  { %v358_v35 = vpop.f32.mrb[3].mxu1 }
  0xec   :  { %v607_v37 = vpop.f32.mrb[4].mxu1 }
  0xed   :  { %v371_v39 = vpop.f32.mrb[5].mxu1 }
  0xee   :  { %v608_v42 = vpop.f32.mrb[6].mxu1 }
  0xef   :  { %v374_v44 = vpop.f32.mrb[7].mxu1 }
  0xf5   :  { %v564_v36 = vpop.f32.mrb[0].mxu0 }
  0xf6   :  { %v565_v38 = vpop.f32.mrb[1].mxu0 }
  0xf7   :  { %v566_v40 = vadd.f32 %v565_v38, %v564_v36  ;;  %v567_v41 = vpop.f32.mrb[2].mxu0 }
  0xf8   :  { %v568_v43 = vpop.f32.mrb[3].mxu0 }
  0xf9   :  { %v569_v45 = vadd.f32 %v568_v43, %v567_v41  ;;  %v356_v46 = vadd.f32 %v566_v40, %v355_v33 }
  0xfb   :  { %v359_v47 = vadd.f32 %v569_v45, %v358_v35  ;;  %v440_v48 = vmul.f32 %v356_v46, %v356_v46 }
  0xfd   :  { %v528_v49 = vpack.c.bf16 %v359_v47, %v356_v46  ;;  %v426_v50 = vadd.f32 %v359_v47, %v356_v46  ;;  %v441_v51 = vmul.f32 %v359_v47, %v359_v47  ;;  %v570_v52 = vpop.f32.mrb[4].mxu0 }
  0xfe   :  { %v571_v53 = vpop.f32.mrb[5].mxu0 }
  0xff   :  { %529 = vst [vmem:[%s787_s2] sm:$0xff] %v528_v49   ;;  %v448_v54 = vadd.f32 %v441_v51, %v440_v48  ;;  %v572_v55 = vadd.f32 %v571_v53, %v570_v52  ;;  %v573_v56 = vpop.f32.mrb[6].mxu0 }
 0x100   :  { %v574_v57 = vpop.f32.mrb[7].mxu0 }
 0x101   :  { %v364_v58 = vadd.f32 %v603_v32, %v572_v55  ;;  %v575_v59 = vadd.f32 %v574_v57, %v573_v56 }
 0x103   :  { %v427_v60 = vadd.f32 %v426_v50, %v364_v58  ;;  %v442_v61 = vmul.f32 %v364_v58, %v364_v58  ;;  %v367_v62 = vadd.f32 %v604_v34, %v575_v59 }
 0x105   :  { %v449_v63 = vadd.f32 %v448_v54, %v442_v61  ;;  %v533_v0 = vpack.c.bf16 %v367_v62, %v364_v58  ;;  %v443_v1 = vmul.f32 %v367_v62, %v367_v62  ;;  %v576_v2 = vpop.f32.mrb[8].mxu0  ;;  %v428_v3 = vadd.f32 %v427_v60, %v367_v62 }
 0x106   :  { %v577_v4 = vpop.f32.mrb[9].mxu0 }
 0x107   :  { %545 = vst [vmem:[%s787_s2 + $0x8] sm:$0xff] %v533_v0   ;;  %v578_v5 = vadd.f32 %v577_v4, %v576_v2  ;;  %v579_v6 = vpop.f32.mrb[10].mxu0  ;;  %v450_v7 = vadd.f32 %v449_v63, %v443_v1 }
 0x108   :  { %v580_v8 = vpop.f32.mrb[11].mxu0 }
 0x109   :  { %v581_v9 = vadd.f32 %v580_v8, %v579_v6  ;;  %v372_v10 = vadd.f32 %v578_v5, %v371_v39 }
 0x10b   :  { %v429_v11 = vadd.f32 %v428_v3, %v372_v10  ;;  %v444_v12 = vmul.f32 %v372_v10, %v372_v10  ;;  %v375_v13 = vadd.f32 %v581_v9, %v374_v44 }
 0x10d   :  { %v451_v14 = vadd.f32 %v450_v7, %v444_v12  ;;  %v538_v15 = vpack.c.bf16 %v375_v13, %v372_v10  ;;  %v430_v16 = vadd.f32 %v429_v11, %v375_v13  ;;  %v445_v17 = vmul.f32 %v375_v13, %v375_v13  ;;  %v582_v18 = vpop.f32.mrb[12].mxu0 }
 0x10e   :  { %v583_v19 = vpop.f32.mrb[13].mxu0 }
 0x10f   :  { %546 = vst [vmem:[%s787_s2 + $0x10] sm:$0xff] %v538_v15   ;;  %v452_v20 = vadd.f32 %v451_v14, %v445_v17  ;;  %v584_v21 = vadd.f32 %v583_v19, %v582_v18  ;;  %v585_v22 = vpop.f32.mrb[14].mxu0 }
 0x110   :  { %v586_v23 = vpop.f32.mrb[15].mxu0 }
 0x111   :  { %v380_v24 = vadd.f32 %v607_v37, %v584_v21  ;;  %v587_v25 = vadd.f32 %v586_v23, %v585_v22 }
 0x113   :  { %v431_v26 = vadd.f32 %v430_v16, %v380_v24  ;;  %v446_v27 = vmul.f32 %v380_v24, %v380_v24  ;;  %v383_v28 = vadd.f32 %v608_v42, %v587_v25 }
 0x115   :  { %v453_v29 = vadd.f32 %v452_v20, %v446_v27  ;;  %v543_v30 = vpack.c.bf16 %v383_v28, %v380_v24  ;;  %v432_v31 = vadd.f32 %v431_v26, %v383_v28  ;;  %v447_v32 = vmul.f32 %v383_v28, %v383_v28 }
 0x117   :  { %547 = vst [vmem:[%s787_s2 + $0x18] sm:$0xff] %v543_v30   ;;  %v433_v33 = vrot.slane %v432_v31, 4  ;;  %v454_v34 = vadd.f32 %v453_v29, %v447_v32 }
 0x119   :  { %v434_v35 = vadd.f32 %v433_v33, %v432_v31  ;;  %v455_v36 = vrot.slane %v454_v34, 4 }
 0x11b   :  { %v435_v38 = vrot.slane %v434_v35, 2  ;;  %v456_v39 = vadd.f32 %v455_v36, %v454_v34 }
 0x11d   :  { %v436_v40 = vadd.f32 %v435_v38, %v434_v35  ;;  %v457_v37 = vrot.slane %v456_v39, 2 }
 0x11f   :  { %v437_v41 = vrot.slane %v436_v40, 1  ;;  %v458_v43 = vadd.f32 %v457_v37, %v456_v39 }
 0x121   :  { %v438_v44 = vadd.f32 %v437_v41, %v436_v40  ;;  %v459_v42 = vrot.slane %v458_v43, 1 }
 0x123   :  { %439 = vst [vmem:[%s788_s3] sm:$0x1] %v438_v44  ;;  %v460_v45 = vadd.f32 %v459_v42, %v458_v43 }
 0x125   :  { %461 = vst [vmem:[%s789_s4] sm:$0x1] %v460_v45 }

</bundles_post_ra>
